<compile_context>
chip_gen: v6e
topology: v6e:2x2x1
jax: 0.10.0
libtpu: 0.0.40
codegen_flags: <defaults>
</compile_context>

<pallas_src>
import math
import jax
import jax.numpy as jnp
from jax.experimental import pallas as pl
from jax.experimental.pallas import tpu as pltpu


def _lstm_layer_kernel(x_ref, s_ref, w_fused_ref, wh_ref, b_ref, out_ref):
    d = out_ref.shape[-1]

    x = x_ref[...].astype(jnp.float32)
    s = s_ref[...].astype(jnp.float32)

    # One lane-dense MXU push for all X/S-only pre-activations:
    #   [X|S] @ [[Uz^T Ug^T Ur^T Uh^T]; [Wz^T Wg^T Wr^T 0]]  -> (B, 4*d_out)
    xs = jnp.concatenate([x, s], axis=-1)
    pre = jnp.dot(xs, w_fused_ref[...],
                  preferred_element_type=jnp.float32) + b_ref[...]

    # Single EUP slab for z, g, r.
    zgr = jnp.tanh(pre[:, : 3 * d])
    z = zgr[:, 0:d]
    g = zgr[:, d:2 * d]
    r = zgr[:, 2 * d:3 * d]

    # Second (and last) MXU push: the R-dependent recurrent matmul.
    h = jnp.tanh(pre[:, 3 * d:4 * d] +
                 jnp.dot(s * r, wh_ref[...], preferred_element_type=jnp.float32))

    out_ref[...] = ((1.0 - g) * h + z * s).astype(out_ref.dtype)


def prepare_lstm_params(params):
    """One-time prepacking (hoisted out of the per-step hot path)."""
    d_out, d_in = params["Uz"].shape
    dt = params["Uz"].dtype
    u_block = jnp.concatenate(
        [params["Uz"].T, params["Ug"].T, params["Ur"].T, params["Uh"].T], axis=1)
    w_block = jnp.concatenate(
        [params["Wz"].T, params["Wg"].T, params["Wr"].T,
         jnp.zeros((d_out, d_out), dt)], axis=1)
    w_fused = jnp.concatenate([u_block, w_block], axis=0)   # (d_in+d_out, 4*d_out)
    wh_t = params["Wh"].T                                    # (d_out, d_out)
    b_fused = jnp.concatenate(
        [params["bz"], params["bg"], params["br"], params["bh"]])[None, :]
    return {"w_fused": w_fused, "wh_t": wh_t, "b_fused": b_fused}


def lstm_layer_pallas(S, X, fused):
    """S: (B, d_out), X: (B, d_in). fused: output of prepare_lstm_params."""
    B, d_out = S.shape
    # Small problem: full arrays as single VMEM blocks (no grid).
    vmem = pl.BlockSpec(memory_space=pltpu.VMEM)
    return pl.pallas_call(
        _lstm_layer_kernel,
        out_shape=jax.ShapeDtypeStruct((B, d_out), S.dtype),
        in_specs=[vmem] * 5,
        out_specs=vmem,
        compiler_params=pltpu.CompilerParams(vmem_limit_bytes=64 * 1024 * 1024),
    )(X, S, fused["w_fused"], fused["wh_t"], fused["b_fused"])


def _xavier_uniform(key, shape):
    # torch.nn.init.xavier_uniform_ for Linear weight (out, in): fan_in=in, fan_out=out
    fan_out, fan_in = shape
    a = math.sqrt(6.0 / (fan_in + fan_out))
    return jax.random.uniform(key, shape, jnp.float32, minval=-a, maxval=a)


def make_params(key, output_dim, input_dim):
    keys = jax.random.split(key, 12)
    p = {
        "Uz": _xavier_uniform(keys[0], (output_dim, input_dim)),
        "Ug": _xavier_uniform(keys[1], (output_dim, input_dim)),
        "Ur": _xavier_uniform(keys[2], (output_dim, input_dim)),
        "Uh": _xavier_uniform(keys[3], (output_dim, input_dim)),
        "Wz": _xavier_uniform(keys[4], (output_dim, output_dim)),
        "Wg": _xavier_uniform(keys[5], (output_dim, output_dim)),
        "Wr": _xavier_uniform(keys[6], (output_dim, output_dim)),
        "Wh": _xavier_uniform(keys[7], (output_dim, output_dim)),
    }
    # torch Linear default bias init: U(-1/sqrt(fan_in), 1/sqrt(fan_in)), fan_in = output_dim
    bb = 1.0 / math.sqrt(output_dim)
    p["bz"] = jax.random.uniform(keys[8], (output_dim,), jnp.float32, -bb, bb)
    p["bg"] = jax.random.uniform(keys[9], (output_dim,), jnp.float32, -bb, bb)
    p["br"] = jax.random.uniform(keys[10], (output_dim,), jnp.float32, -bb, bb)
    p["bh"] = jax.random.uniform(keys[11], (output_dim,), jnp.float32, -bb, bb)
    return p


def lstm_layer_ref(S, X, p):
    def lin(x, w, b=None):
        y = x @ w.T
        return y if b is None else y + b
    Z = jnp.tanh(lin(X, p["Uz"]) + lin(S, p["Wz"], p["bz"]))
    G = jnp.tanh(lin(X, p["Ug"]) + lin(S, p["Wg"], p["bg"]))
    R = jnp.tanh(lin(X, p["Ur"]) + lin(S, p["Wr"], p["br"]))
    H = jnp.tanh(lin(X, p["Uh"]) + lin(S * R, p["Wh"], p["bh"]))
    return (1.0 - G) * H + Z * S


if __name__ == "__main__":
    key = jax.random.PRNGKey(0)
    k_p, k_s, k_x = jax.random.split(key, 3)

    batch = 8
    input_dim = 16
    output_dim = 32   # 4*output_dim = 128 -> lane-dense fused gate slab

    params = make_params(k_p, output_dim, input_dim)
    fused = prepare_lstm_params(params)          # one-time prepack, not per step
    fused = jax.tree_util.tree_map(jax.block_until_ready, fused)

    S = jax.random.normal(k_s, (batch, output_dim), jnp.float32)
    X = jax.random.normal(k_x, (batch, input_dim), jnp.float32)

    out = lstm_layer_pallas(S, X, fused)
    out = jax.block_until_ready(out)

    ref = lstm_layer_ref(S, X, params)
    assert out.shape == (batch, output_dim)
    assert jnp.allclose(out, ref, atol=1e-5, rtol=1e-5), "mismatch vs reference"

    print("KERNEL_OK")
</pallas_src>

<mosaic_0001>
module attributes {stable_mosaic.version = 11 : i64} {
  func.func @_lstm_layer_kernel(%arg0: memref<8x16xf32, #tpu.memory_space<vmem>>, %arg1: memref<8x32xf32, #tpu.memory_space<vmem>>, %arg2: memref<48x128xf32, #tpu.memory_space<vmem>>, %arg3: memref<32x32xf32, #tpu.memory_space<vmem>>, %arg4: memref<1x128xf32, #tpu.memory_space<vmem>>, %arg5: memref<8x32xf32, #tpu.memory_space<vmem>>) attributes {dimension_semantics = [], scalar_prefetch = 0 : i64, scratch_operands = 0 : i64, tpu.core_type = #tpu.core_type<tc>} {
    %c0 = arith.constant 0 : index
    %c0_0 = arith.constant 0 : index
    %0 = vector.load %arg0[%c0, %c0_0] : memref<8x16xf32, #tpu.memory_space<vmem>>, vector<8x16xf32>
    %c0_1 = arith.constant 0 : index
    %c0_2 = arith.constant 0 : index
    %1 = vector.load %arg1[%c0_1, %c0_2] : memref<8x32xf32, #tpu.memory_space<vmem>>, vector<8x32xf32>
    %2 = tpu.concatenate %0, %1 in 1 : vector<8x16xf32>, vector<8x32xf32> -> vector<8x48xf32>
    %c0_3 = arith.constant 0 : index
    %c0_4 = arith.constant 0 : index
    %3 = vector.load %arg2[%c0_3, %c0_4] : memref<48x128xf32, #tpu.memory_space<vmem>>, vector<48x128xf32>
    %cst = arith.constant dense<0.000000e+00> : vector<8x128xf32>
    %4 = tpu.matmul %2, %3, %cst {dimension_numbers = #tpu.dot_dimension_numbers<[1], [0], [0], [1], [0, 0, 1, 1], [], []>} : vector<8x48xf32>, vector<48x128xf32>, vector<8x128xf32> -> vector<8x128xf32>
    %c0_5 = arith.constant 0 : index
    %c0_6 = arith.constant 0 : index
    %5 = vector.load %arg4[%c0_5, %c0_6] : memref<1x128xf32, #tpu.memory_space<vmem>>, vector<1x128xf32>
    %6 = vector.broadcast %5 : vector<1x128xf32> to vector<8x128xf32>
    %7 = arith.addf %4, %6 : vector<8x128xf32>
    %8 = vector.extract_strided_slice %7 {offsets = [0, 0], sizes = [8, 96], strides = [1, 1]} : vector<8x128xf32> to vector<8x96xf32>
    %9 = math.tanh %8 : vector<8x96xf32>
    %10 = vector.extract_strided_slice %9 {offsets = [0, 0], sizes = [8, 32], strides = [1, 1]} : vector<8x96xf32> to vector<8x32xf32>
    %11 = vector.extract_strided_slice %9 {offsets = [0, 32], sizes = [8, 32], strides = [1, 1]} : vector<8x96xf32> to vector<8x32xf32>
    %12 = vector.extract_strided_slice %9 {offsets = [0, 64], sizes = [8, 32], strides = [1, 1]} : vector<8x96xf32> to vector<8x32xf32>
    %13 = vector.extract_strided_slice %7 {offsets = [0, 96], sizes = [8, 32], strides = [1, 1]} : vector<8x128xf32> to vector<8x32xf32>
    %14 = arith.mulf %1, %12 : vector<8x32xf32>
    %c0_7 = arith.constant 0 : index
    %c0_8 = arith.constant 0 : index
    %15 = vector.load %arg3[%c0_7, %c0_8] : memref<32x32xf32, #tpu.memory_space<vmem>>, vector<32x32xf32>
    %cst_9 = arith.constant dense<0.000000e+00> : vector<8x32xf32>
    %16 = tpu.matmul %14, %15, %cst_9 {dimension_numbers = #tpu.dot_dimension_numbers<[1], [0], [0], [1], [0, 0, 1, 1], [], []>} : vector<8x32xf32>, vector<32x32xf32>, vector<8x32xf32> -> vector<8x32xf32>
    %17 = arith.addf %13, %16 : vector<8x32xf32>
    %18 = math.tanh %17 : vector<8x32xf32>
    %cst_10 = arith.constant 1.000000e+00 : f32
    %19 = vector.broadcast %cst_10 : f32 to vector<8x32xf32>
    %20 = arith.subf %19, %11 : vector<8x32xf32>
    %21 = arith.mulf %20, %18 : vector<8x32xf32>
    %22 = arith.mulf %10, %1 : vector<8x32xf32>
    %23 = arith.addf %21, %22 : vector<8x32xf32>
    %c0_11 = arith.constant 0 : index
    %c0_12 = arith.constant 0 : index
    %24 = vector.load %arg5[%c0_11, %c0_12] : memref<8x32xf32, #tpu.memory_space<vmem>>, vector<8x32xf32>
    tpu.vector_store %arg5[%c0_11, %c0_12], %23 {strides = array<i32>} : memref<8x32xf32, #tpu.memory_space<vmem>>, vector<8x32xf32>,
    return
  }
}

</mosaic_0001>

<bundles_post_ra>
// kernel: tpu_custom_call.1
= control target key start
LH: loop header
LB: loop body
LE: loop exit
PB: predicated region body
PF: predicated region fallthrough
CT: control target
= control target key end

     0   :  { %10 = vsyncpa [#allocation3], 0  ;;  %s520_s0 = inlined_call_operand.hbm [shape: f32[8,16], index: 0, kind: input, shape index: {}]   ;;  %s521_s1 = inlined_call_operand.hbm [shape: f32[8,32], index: 1, kind: input, shape index: {}]   ;;  %s522_s2 = inlined_call_operand.hbm [shape: f32[48,128], index: 2, kind: input, shape index: {}]   ;;  %s523_s3 = inlined_call_operand.hbm [shape: f32[32,32], index: 3, kind: input, shape index: {}]   ;;  %s524_s4 = inlined_call_operand.vmem [shape: f32[1,128], index: 4, kind: input, shape index: {}]   ;;  %s525_s5 = inlined_call_operand.hbm [shape: f32[8,32], index: 5, kind: output, shape index: {}]  }
   0x1   :  { %11 = vsyncpa [#allocation6], 0 }
   0x2   :  { %12 = vsyncpa [#allocation9], 0 }
   0x3   :  { %13 = vsyncpa [#allocation4], 0  ;;  %s457_s18 = smov [#allocation5]   ;;  %s458_s20 = smov [#allocation2]  }
   0x4   :  { %s30_s19 = sshll.u32 %s457_s18, 4  ;;  %s20_s21 = sshll.u32 %s458_s20, 4  ;;  %s31_s19 = int_to_ptr.vmem [resolvable:$true] %s30_s19  ;;  %s21_s21 = int_to_ptr.vmem [resolvable:$true] %s20_s21 }
   0x5   :  { %s357_s22 = scalar_lea.vmem %s31_s19, 128  ;;  %p362_p1 = scmp.lt.s32.totalorder %s31_s19, %s31_s19 }
   0x6   :  { %p358_p0 = scmp.ne.s32.totalorder %s31_s19, %s357_s22  ;;  %p363_p2 = scmp.lt.s32.totalorder %s357_s22, %s357_s22 }
   0x8   :  { %p364_p3 = por %p363_p2, %p362_p1 }
   0xa   :  { %p365_p4 = pnand %p364_p3, %p358_p0 }
   0xc   :  { %368 = shalt.err (!%p365_p4)
}
   0xd   :  { %33 = dma.hbm_to_vmem [thread:$0]  %s521_s1, 128, %s31_s19, [#allocation6]  }
   0xe   :  { %s377_s25 = scalar_lea.vmem %s21_s21, 128  ;;  %p382_p6 = scmp.lt.s32.totalorder %s21_s21, %s21_s21 }
   0xf   :  { %p378_p5 = scmp.ne.s32.totalorder %s21_s21, %s377_s25  ;;  %p383_p7 = scmp.lt.s32.totalorder %s377_s25, %s377_s25 }
  0x11   :  { %p384_p8 = por %p383_p7, %p382_p6 }
  0x13   :  { %p385_p9 = pnand %p384_p8, %p378_p5 }
  0x15   :  { %388 = shalt.err (!%p385_p9)
}
  0x16   :  { %23 = dma.hbm_to_vmem [thread:$0]  %s520_s0, 128, %s21_s21, [#allocation3]  }
  0x17   :  { %s459_s28 = smov [#allocation7]  }
  0x18   :  { %s39_s29 = sshll.u32 %s459_s28, 4  ;;  %s40_s29 = int_to_ptr.vmem [resolvable:$true] %s39_s29 }
  0x19   :  { %s397_s30 = scalar_lea.vmem %s40_s29, 768  ;;  %p402_p11 = scmp.lt.s32.totalorder %s40_s29, %s40_s29 }
  0x1a   :  { %p398_p10 = scmp.ne.s32.totalorder %s40_s29, %s397_s30  ;;  %p403_p12 = scmp.lt.s32.totalorder %s397_s30, %s397_s30 }
  0x1c   :  { %p404_p13 = por %p403_p12, %p402_p11 }
  0x1e   :  { %p405_p0 = pnand %p404_p13, %p398_p10 }
  0x20   :  { %408 = shalt.err (!%p405_p0)
}
  0x21   :  { %s460_s1 = smov 128   ;;  %s461_s6 = smov 8  }
  0x22   :  { %45 = dma.hbm_to_vmem [thread:$0]  %s522_s2, 768, %s40_s29, [#allocation6], %s460_s1, %s460_s1, %s461_s6  }
  0x23   :  { %s462_s9 = smov [#allocation8]  }
  0x24   :  { %s51_s10 = sshll.u32 %s462_s9, 4  ;;  %s52_s10 = int_to_ptr.vmem [resolvable:$true] %s51_s10 }
  0x25   :  { %s417_s0 = scalar_lea.vmem %s52_s10, 512  ;;  %p422_p2 = scmp.lt.s32.totalorder %s52_s10, %s52_s10 }
  0x26   :  { %p418_p1 = scmp.ne.s32.totalorder %s52_s10, %s417_s0  ;;  %p423_p3 = scmp.lt.s32.totalorder %s417_s0, %s417_s0 }
  0x28   :  { %p424_p4 = por %p423_p3, %p422_p2 }
  0x2a   :  { %p425_p5 = pnand %p424_p4, %p418_p1 }
  0x2c   :  { %428 = shalt.err (!%p425_p5)
}
  0x2d   :  { %57 = dma.hbm_to_vmem [thread:$0]  %s523_s3, 512, %s52_s10, [#allocation9], %s460_s1, %s460_s1, %s461_s6  }
  0x2e   :  { %449 = dma.done.wait [#allocation3], 128  }
  0x2f   :  { %450 = vsyncadd [#allocation3], 4294967168 }
  0x30   :  { %451 = dma.done.wait [#allocation6], 896  }
  0x31   :  { %452 = vsyncadd [#allocation6], 4294966400 }
  0x32   :  { %453 = dma.done.wait [#allocation9], 512  }
  0x33   :  { %454 = vsyncadd [#allocation9], 4294966784  ;;  %v463_v0 = vmov 0.0   ;;  %vm464_vm0 = vmmov 0   ;;  %v73_v1 = vld [vmem:[#allocation5] sm:$0xff]  ;;  %v85_v2 = vld [vmem:[#allocation7 + $0x28] sm:$0xff] }
  0x34   :  { %306 = vmatprep.subr.mxu0 %v463_v0  ;;  %318 = vmatprep.mubr.msk.f32.mxu0 %vm464_vm0, %v463_v0  ;;  %v84_v3 = vld [vmem:[#allocation7 + $0x20] sm:$0xff]  ;;  %s465_s2 = smov 16   ;;  %v83_v4 = vld [vmem:[#allocation7 + $0x18] sm:$0xff]  ;;  %v82_v5 = vld [vmem:[#allocation7 + $0x10] sm:$0xff]  ;;  %vm78_vm1 = vcmask 130048   ;;  %vm93_vm2 = vcmask 392192  }
  0x35   :  { %321 = vmatprep.subr.mxu1 %v463_v0  ;;  %329 = vmatprep.mubr.msk.f32.mxu1 %vm464_vm0, %v463_v0  ;;  %v81_v6 = vld [vmem:[#allocation7 + $0x8] sm:$0xff]  ;;  %v80_v7 = vld [vmem:[#allocation7] sm:$0xff]  ;;  %v72_v8 = vld [vmem:[#allocation2] sm:$0xff]  ;;  %s466_s14 = smov 64   ;;  %s467_s15 = smov 32   ;;  %vm177_vm3 = vcmask 261120  }
  0x36   :  { %75 = vrot.lane.b32.xlu0 %v73_v1, %s465_s2  ;;  %307 = vmatpush3.msra.mxu0 %v85_v2  ;;  %v176_v11 = vld [vmem:[#allocation8 + $0x18] sm:$0xff]  ;;  %v175_v12 = vld [vmem:[#allocation8 + $0x10] sm:$0xff]  ;;  %v174_v13 = vld [vmem:[#allocation8 + $0x8] sm:$0xff]  ;;  %s468_s16 = smov 96  }
  0x37   :  { %308 = vmatprep.subr.mxu0 %v463_v0  ;;  %322 = vmatpush3.msra.mxu1 %v176_v11  ;;  %v291_v14 = vld [vmem:[%s524_s4] ss:$0 sm:$0xff]  ;;  %s469_s4 = smov [#allocation10]  }
  0x38   :  { %309 = vmatpush3.msra.mxu0 %v84_v3  ;;  %323 = vmatprep.subr.mxu1 %v463_v0  ;;  %v173_v18 = vld [vmem:[#allocation8] sm:$0xff]  ;;  %s280_s17 = sshll.u32 %s469_s4, 4  ;;  %s281_s17 = int_to_ptr.vmem [resolvable:$true] %s280_s17 }
  0x39   :  { %310 = vmatprep.subr.mxu0 %v463_v0  ;;  %324 = vmatpush3.msra.mxu1 %v175_v12  ;;  %s429_s18 = scalar_lea.vmem %s281_s17, 128  ;;  %p434_p7 = scmp.lt.s32.totalorder %s281_s17, %s281_s17 }
  0x3a   :  { %311 = vmatpush3.msra.mxu0 %v83_v4  ;;  %325 = vmatprep.subr.mxu1 %v463_v0  ;;  %p430_p6 = scmp.ne.s32.totalorder %s281_s17, %s429_s18  ;;  %p435_p8 = scmp.lt.s32.totalorder %s429_s18, %s429_s18 }
  0x3b   :  { %312 = vmatprep.subr.mxu0 %v463_v0  ;;  %326 = vmatpush3.msra.mxu1 %v174_v13 }
  0x3c   :  { %313 = vmatpush3.msra.mxu0 %v82_v5  ;;  %327 = vmatprep.subr.mxu1 %v463_v0  ;;  %p436_p9 = por %p435_p8, %p434_p7 }
  0x3d   :  { %314 = vmatprep.subr.mxu0 %v463_v0  ;;  %328 = vmatpush3.msra.mxu1 %v173_v18 }
  0x3e   :  { %315 = vmatpush3.msra.mxu0 %v81_v6  ;;  %p437_p10 = pnand %p436_p9, %p430_p6 }
  0x3f   :  { %316 = vmatprep.subr.mxu0 %v463_v0 }
  0x40   :  { %317 = vmatpush3.msra.mxu0 %v80_v7 }
  0xa8   :  { %v76_v9 = vpop.permute.xlu0 %75 }
  0xa9   :  { %v79_v10 = vsel %vm78_vm1, %v72_v8, %v76_v9 }
  0xaa   :  { %319 = vmatmul.mubr.msk.f32.vlgmr.msra.gmra.mxu0 %vm93_vm2, %v79_v10 }
 0x16a   :  { %v163_v15 = vpop.f32.mrf.mxu0 }
 0x16b   :  { %v164_v16 = vadd.f32 %v291_v14, %v163_v15 }
 0x16c   :  { %v320_v17 = vpop.f32.mrf.mxu0 }
 0x16d   :  { %345 = vtanh.f32 %v164_v16 }
 0x17a   :  { %v346_v19 = vpop.eup %345 }
 0x17b   :  { %169 = vrot.lane.b32.xlu0 %v346_v19, %s466_s14  ;;  %v263_v20 = vmul.f32 %v346_v19, %v73_v1  ;;  %v257_v28 = vsub.f32 1.0, %v346_v19 }
 0x17f   :  { %265 = vrot.lane.b32.xlu0 %v263_v20, %s467_s15 }
 0x1ed   :  { %v170_v21 = vpop.permute.xlu0 %169 }
 0x1ee   :  { %v172_v22 = vmul.f32 %v170_v21, %v73_v1 }
 0x1f0   :  { %330 = vmatmul.mubr.msk.f32.vlgmr.msra.gmra.mxu1 %vm177_vm3, %v172_v22 }
 0x1f1   :  { %v266_v31 = vpop.permute.xlu0 %265 }
 0x2b0   :  { %v247_v23 = vpop.f32.mrf.mxu1 }
 0x2b1   :  { %252 = vrot.lane.b32.xlu1 %v247_v23, %s468_s16 }
 0x2b2   :  { %v331_v24 = vpop.f32.mrf.mxu1 }
 0x323   :  { %v253_v25 = vpop.permute.xlu1 %252 }
 0x324   :  { %v255_v26 = vadd.f32 %v253_v25, %v164_v16 }
 0x326   :  { %347 = vtanh.f32 %v255_v26 }
 0x333   :  { %v348_v27 = vpop.eup %347 }
 0x334   :  { %259 = vrot.lane.b32.xlu1 %v348_v27, %s466_s14 }
 0x3a6   :  { %v260_v29 = vpop.permute.xlu1 %259 }
 0x3a7   :  { %v262_v30 = vmul.f32 %v260_v29, %v257_v28 }
 0x3a9   :  { %v268_v32 = vadd.f32 %v266_v31, %v262_v30 }
 0x3ab   :  { %270 = vrot.lane.b32.xlu1 %v268_v32, %s468_s16 }
 0x41d   :  { %v271_v33 = vpop.permute.xlu1 %270 }
 0x41e   :  { %273 = vst.msk [vmem:[#allocation10] sm:$0xff] %vm177_vm3, %v271_v33 }
 0x41f   :  { %440 = shalt.err (!%p437_p10)
}
 0x420   :  { %283 = dma.vmem_to_hbm [thread:$0]  %s281_s17, 128, %s525_s5, [#allocation4]  }
 0x421   :  { %455 = dma.done.wait [#allocation4], 128  }
 0x422   :  { %456 = vsyncadd [#allocation4], 4294967168 }
 0x423   :  { %287 = vsyncpa [#allocation3], 1 }
 0x424   :  { %288 = vsyncpa [#allocation6], 1 }
 0x425   :  { %289 = vsyncpa [#allocation9], 1 }
 0x426   :  { %290 = vsyncpa [#allocation4], 1 }

</bundles_post_ra>
